<compile_context>
chip_gen: v7x
topology: tpu7x:2x2x1
jax: 0.10.0
libtpu: 0.0.40
codegen_flags: <defaults>
</compile_context>

<pallas_src>
import math
from functools import partial

import jax
import jax.numpy as jnp
from jax.experimental import pallas as pl
from jax.experimental.pallas import tpu as pltpu

_INV_SQRT2 = 1.0 / math.sqrt(2.0)


def _round_up(x, m):
    return ((x + m - 1) // m) * m


def _epilogue(h, g, beta, mask, out_dtype, *, approximate_gelu, ln_eps):
    """LayerNorm (two-pass) -> GELU -> masked_fill(0) on an f32 (tm, D_hid) tile."""
    mu = jnp.mean(h, axis=-1, keepdims=True)
    xc = h - mu
    var = jnp.mean(xc * xc, axis=-1, keepdims=True)
    hn = xc * jax.lax.rsqrt(var + ln_eps)
    hn = hn * g + beta
    if approximate_gelu:
        # tanh approximation (EUP path) -- only if the accuracy budget allows.
        y = jax.nn.gelu(hn, approximate=True)
    else:
        # Exact erf GELU (matches torch.nn.GELU default).
        y = hn * (0.5 * (1.0 + jax.lax.erf(hn * _INV_SQRT2)))
    # zero_padding_memories == masked_fill: exact zeros at padded rows.
    return jnp.where(mask != 0, 0.0, y).astype(out_dtype)


def _bve_fused_kernel(x_ref, w_ref, b_ref, g_ref, beta_ref, m_ref, o_ref, *,
                      matmul_dtype, approximate_gelu, ln_eps):
    """Full-K path: grid = (row_tiles,).  W block index is constant -> one fetch."""
    x = x_ref[...]
    if matmul_dtype is not None and x.dtype != matmul_dtype:
        x = x.astype(matmul_dtype)          # only when x arrived un-cast (no pad path)
    h = jnp.dot(x, w_ref[...], preferred_element_type=jnp.float32) + b_ref[...]
    o_ref[...] = _epilogue(h, g_ref[...], beta_ref[...], m_ref[...], o_ref.dtype,
                           approximate_gelu=approximate_gelu, ln_eps=ln_eps)


def _bve_ktiled_kernel(x_ref, w_ref, b_ref, g_ref, beta_ref, m_ref, o_ref, acc_ref, *,
                       matmul_dtype, approximate_gelu, ln_eps):
    """K-tiled fallback for very large video_dim*hidden_dim.  Grid = (rows, K)."""
    k = pl.program_id(1)
    nk = pl.num_programs(1)

    @pl.when(k == 0)
    def _init():
        acc_ref[...] = jnp.zeros_like(acc_ref)

    x = x_ref[...]
    if matmul_dtype is not None and x.dtype != matmul_dtype:
        x = x.astype(matmul_dtype)
    acc_ref[...] += jnp.dot(x, w_ref[...], preferred_element_type=jnp.float32)

    @pl.when(k == nk - 1)
    def _finalize():
        h = acc_ref[...] + b_ref[...]
        o_ref[...] = _epilogue(h, g_ref[...], beta_ref[...], m_ref[...], o_ref.dtype,
                               approximate_gelu=approximate_gelu, ln_eps=ln_eps)


def base_video_encoder_forward(video_features, video_masks, w, b, gamma, beta, *,
                               tm=512, tk=512,
                               matmul_dtype=jnp.bfloat16,
                               approximate_gelu=False,
                               ln_eps=1e-5,
                               vmem_cap_bytes=48 * 1024 * 1024,
                               w_vmem_budget_bytes=16 * 1024 * 1024):
    """video_features: (B, T, video_dim) float32
       video_masks:    (B, T) bool (True = padded position -> zeroed)
       w:              (video_dim, hidden_dim)  (transposed vs nn.Linear.weight)
       b, gamma, beta: (hidden_dim,)
       returns:        (B, T, hidden_dim) in video_features.dtype
    """
    B, T, D_in = video_features.shape
    D_hid = w.shape[1]
    M = B * T
    out_dtype = video_features.dtype
    out_bytes = jnp.dtype(out_dtype).itemsize
    w_elt_bytes = (jnp.dtype(matmul_dtype).itemsize if matmul_dtype is not None
                   else jnp.dtype(w.dtype).itemsize)
    d_hid_pad = _round_up(D_hid, 128)      # VMEM lane padding for estimates

    # ---- K path: stream the whole (bf16) weight once if it fits in VMEM. ----
    k_tiled = 2 * _round_up(D_in, 8) * d_hid_pad * w_elt_bytes > w_vmem_budget_bytes
    if k_tiled:
        tk_eff = min(_round_up(tk, 128), _round_up(D_in, 128))
        K_pad = _round_up(D_in, tk_eff)
    else:
        tk_eff = D_in                      # full-K block (== full array dim is legal)
        K_pad = D_in

    # ---- VMEM working-set estimate (x at 4 B/elem worst case). --------------
    def est_vmem(tm_e):
        est = 2 * tm_e * _round_up(tk_eff, 128) * 4                   # x (dbl-buffered)
        est += 2 * _round_up(tk_eff, 8) * d_hid_pad * w_elt_bytes     # W
        est += 2 * tm_e * d_hid_pad * out_bytes                       # out
        est += 2 * tm_e * 128 * 4                                     # mask lane-pads
        est += 3 * 2 * 8 * d_hid_pad * 4                              # bias/gamma/beta
        if k_tiled:
            est += tm_e * d_hid_pad * 4                               # accumulator
        return est

    # ---- Row tiling: pad M by <= 8*n_rows rows (tile divides M_pad exactly),
    #      keep >= 2 row tiles so both v7x TensorCores get work. --------------
    M8 = _round_up(M, 8)
    tm_t = max(8, min(_round_up(tm, 8), M8))
    while tm_t > 8 and est_vmem(tm_t) > vmem_cap_bytes:
        tm_t = max(8, _round_up(tm_t // 2, 8))
    n_rows = max(1, pl.cdiv(M8, tm_t))
    if M8 >= 16:
        n_rows = max(n_rows, 2)
    tm_eff = _round_up(pl.cdiv(M8, n_rows), 8)
    M_pad = n_rows * tm_eff

    # ---- Operand preparation. ------------------------------------------------
    x2 = video_features.reshape(M, D_in)
    need_pad_x = (M_pad != M) or (K_pad != D_in)
    if need_pad_x:
        # The pad materializes a copy anyway -> fuse the bf16 cast into it so the
        # kernel's dominant x byte stream is halved with no extra HBM pass.
        if matmul_dtype is not None:
            x2 = x2.astype(matmul_dtype)
        x2 = jnp.pad(x2, ((0, M_pad - M), (0, K_pad - D_in)))
    # else: x stays in its original dtype; the kernel casts the tile on the VPU.

    w2 = w.astype(matmul_dtype) if matmul_dtype is not None else w
    if K_pad != D_in:
        w2 = jnp.pad(w2, ((0, K_pad - D_in), (0, 0)))

    m2 = video_masks.reshape(M, 1).astype(jnp.int32)
    if M_pad != M:
        m2 = jnp.pad(m2, ((0, M_pad - M), (0, 0)), constant_values=1)

    b2 = b.reshape(1, D_hid).astype(jnp.float32)
    g2 = gamma.reshape(1, D_hid).astype(jnp.float32)
    bt2 = beta.reshape(1, D_hid).astype(jnp.float32)

    n_k = K_pad // tk_eff
    w_streams = n_rows if n_k > 1 else 1
    cost = pl.CostEstimate(
        flops=2 * M_pad * K_pad * D_hid,
        transcendentals=M_pad * D_hid + M_pad,
        bytes_accessed=(M_pad * K_pad * x2.dtype.itemsize
                        + w_streams * K_pad * D_hid * w2.dtype.itemsize
                        + M_pad * D_hid * out_bytes
                        + M_pad * 4 + 3 * D_hid * 4),
    )

    est = est_vmem(tm_eff)
    vmem_limit = None
    if est > 12 * 1024 * 1024:   # may exceed v5e's 16 MiB scoped default
        vmem_limit = int(min(max(est * 3 // 2, 32 * 1024 * 1024), vmem_cap_bytes))

    kernel_kwargs = dict(matmul_dtype=matmul_dtype,
                         approximate_gelu=approximate_gelu, ln_eps=ln_eps)

    if n_k == 1:
        grid_spec = pltpu.PrefetchScalarGridSpec(
            num_scalar_prefetch=0,
            grid=(n_rows,),
            in_specs=[
                pl.BlockSpec((tm_eff, K_pad), lambda i: (i, 0)),   # x row tile
                pl.BlockSpec((K_pad, D_hid), lambda i: (0, 0)),    # full W, fetched once
                pl.BlockSpec((1, D_hid), lambda i: (0, 0)),        # bias
                pl.BlockSpec((1, D_hid), lambda i: (0, 0)),        # LN gamma
                pl.BlockSpec((1, D_hid), lambda i: (0, 0)),        # LN beta
                pl.BlockSpec((tm_eff, 1), lambda i: (i, 0)),       # mask tile
            ],
            out_specs=pl.BlockSpec((tm_eff, D_hid), lambda i: (i, 0)),
        )
        kernel = partial(_bve_fused_kernel, **kernel_kwargs)
        dim_sem = ("parallel",)
    else:
        grid_spec = pltpu.PrefetchScalarGridSpec(
            num_scalar_prefetch=0,
            grid=(n_rows, n_k),
            in_specs=[
                pl.BlockSpec((tm_eff, tk_eff), lambda i, k: (i, k)),   # x tile
                pl.BlockSpec((tk_eff, D_hid), lambda i, k: (k, 0)),    # W (K-tiled)
                pl.BlockSpec((1, D_hid), lambda i, k: (0, 0)),         # bias
                pl.BlockSpec((1, D_hid), lambda i, k: (0, 0)),         # LN gamma
                pl.BlockSpec((1, D_hid), lambda i, k: (0, 0)),         # LN beta
                pl.BlockSpec((tm_eff, 1), lambda i, k: (i, 0)),        # mask tile
            ],
            out_specs=pl.BlockSpec((tm_eff, D_hid), lambda i, k: (i, 0)),
            scratch_shapes=[pltpu.VMEM((tm_eff, D_hid), jnp.float32)],
        )
        kernel = partial(_bve_ktiled_kernel, **kernel_kwargs)
        dim_sem = ("parallel", "arbitrary")

    out = pl.pallas_call(
        kernel,
        out_shape=jax.ShapeDtypeStruct((M_pad, D_hid), out_dtype),
        grid_spec=grid_spec,
        compiler_params=pltpu.CompilerParams(
            dimension_semantics=dim_sem,
            vmem_limit_bytes=vmem_limit),
        cost_estimate=cost,
    )(x2, w2, b2, g2, bt2, m2)

    if M_pad != M:
        out = out[:M]
    return out.reshape(B, T, D_hid)


def _reference(video_features, video_masks, w, b, gamma, beta, *, matmul_dtype=None):
    x, wm = video_features, w
    if matmul_dtype is not None:
        x = x.astype(matmul_dtype)
        wm = wm.astype(matmul_dtype)
    h = jnp.einsum("btd,dh->bth", x, wm,
                   preferred_element_type=jnp.float32) + b
    mu = jnp.mean(h, axis=-1, keepdims=True)
    var = jnp.mean((h - mu) ** 2, axis=-1, keepdims=True)
    hn = (h - mu) / jnp.sqrt(var + 1e-5) * gamma + beta
    y = 0.5 * hn * (1.0 + jax.lax.erf(hn / math.sqrt(2.0)))
    return jnp.where(video_masks[..., None], 0.0, y)


def _make_inputs(key, B, T, video_dim, hidden_dim):
    k_x, k_w, k_b, k_g, k_bt = jax.random.split(key, 5)
    video_features = jax.random.normal(k_x, (B, T, video_dim), dtype=jnp.float32)
    video_masks = jnp.arange(T)[None, :] >= (T - 3)          # last 3 positions padded
    video_masks = jnp.broadcast_to(video_masks, (B, T))
    bound = 1.0 / math.sqrt(video_dim)
    w = jax.random.uniform(k_w, (video_dim, hidden_dim),
                           minval=-bound, maxval=bound, dtype=jnp.float32)
    b = jax.random.uniform(k_b, (hidden_dim,),
                           minval=-bound, maxval=bound, dtype=jnp.float32)
    gamma = 1.0 + 0.1 * jax.random.normal(k_g, (hidden_dim,), dtype=jnp.float32)
    beta = 0.1 * jax.random.normal(k_bt, (hidden_dim,), dtype=jnp.float32)
    return video_features, video_masks, w, b, gamma, beta


if __name__ == "__main__":
    key0, key1 = jax.random.split(jax.random.PRNGKey(0), 2)

    # --- Config 1: lane-dense hidden_dim, fused (single-K) path, no padding.
    B, T, video_dim, hidden_dim = 2, 8, 128, 128
    vf, vm, w, b, gamma, beta = _make_inputs(key0, B, T, video_dim, hidden_dim)

    out = base_video_encoder_forward(vf, vm, w, b, gamma, beta)
    out = jax.block_until_ready(out)
    assert out.shape == (B, T, hidden_dim)
    # Padded positions must be exactly zero (masked_fill semantics via where).
    assert bool(jnp.all(jnp.where(vm[..., None], out, 0.0) == 0.0))
    # Tight check vs. a reference using the same bf16 matmul operands.
    ref_matched = _reference(vf, vm, w, b, gamma, beta, matmul_dtype=jnp.bfloat16)
    assert jnp.allclose(out, ref_matched, atol=1e-4, rtol=1e-4), \
        "mismatch vs bf16-matched reference (config 1)"
    # Loose check vs. the pure f32 reference (bf16 matmul rounding only).
    ref_f32 = _reference(vf, vm, w, b, gamma, beta)
    assert jnp.allclose(out, ref_f32, atol=2e-2, rtol=2e-2), \
        "mismatch vs f32 reference (config 1)"

    # --- Config 2: ragged M (pad + fused bf16 cast) and forced K-tiled path.
    B2, T2, vd2, hd2 = 2, 7, 384, 128
    vf2, vm2, w2, b2, g2, bt2 = _make_inputs(key1, B2, T2, vd2, hd2)
    out2 = base_video_encoder_forward(vf2, vm2, w2, b2, g2, bt2,
                                      tk=128, w_vmem_budget_bytes=0)
    out2 = jax.block_until_ready(out2)
    assert out2.shape == (B2, T2, hd2)
    assert bool(jnp.all(jnp.where(vm2[..., None], out2, 0.0) == 0.0))
    ref2 = _reference(vf2, vm2, w2, b2, g2, bt2, matmul_dtype=jnp.bfloat16)
    assert jnp.allclose(out2, ref2, atol=1e-4, rtol=1e-4), \
        "mismatch vs bf16-matched reference (config 2, K-tiled path)"

    # TODO(synk): _encoder() is abstract (identity in the base class), dropout
    # rate is 0.0 and norm_after defaults to False, so no extra compute is
    # required here; video_length is unused by the base forward.
    print("KERNEL_OK")
</pallas_src>

<mosaic_0001>
module attributes {stable_mosaic.version = 11 : i64} {
  func.func @_bve_fused_kernel(%arg0: i32, %arg1: memref<8x128xf32, #tpu.memory_space<vmem>>, %arg2: memref<128x128xbf16, #tpu.memory_space<vmem>>, %arg3: memref<1x128xf32, #tpu.memory_space<vmem>>, %arg4: memref<1x128xf32, #tpu.memory_space<vmem>>, %arg5: memref<1x128xf32, #tpu.memory_space<vmem>>, %arg6: memref<8x1xi32, #tpu.memory_space<vmem>>, %arg7: memref<8x128xf32, #tpu.memory_space<vmem>>) attributes {dimension_semantics = [#tpu.dimension_semantics<parallel>], iteration_bounds = array<i64: 2>, scalar_prefetch = 0 : i64, scratch_operands = 0 : i64, tpu.core_type = #tpu.core_type<tc>, window_params = [{transform_indices = @transform_0, window_bounds = array<i64: 8, 128>}, {pipeline_mode = #tpu.pipeline_mode<synchronous>, transform_indices = @transform_1, window_bounds = array<i64: 128, 128>}, {pipeline_mode = #tpu.pipeline_mode<synchronous>, transform_indices = @transform_2, window_bounds = array<i64: 1, 128>}, {pipeline_mode = #tpu.pipeline_mode<synchronous>, transform_indices = @transform_3, window_bounds = array<i64: 1, 128>}, {pipeline_mode = #tpu.pipeline_mode<synchronous>, transform_indices = @transform_4, window_bounds = array<i64: 1, 128>}, {transform_indices = @transform_5, window_bounds = array<i64: 8, 1>}, {transform_indices = @transform_6, window_bounds = array<i64: 8, 128>}]} {
    %c0 = arith.constant 0 : index
    %c0_0 = arith.constant 0 : index
    %0 = vector.load %arg1[%c0, %c0_0] : memref<8x128xf32, #tpu.memory_space<vmem>>, vector<8x128xf32>
    %1 = arith.truncf %0 : vector<8x128xf32> to vector<8x128xbf16>
    %c0_1 = arith.constant 0 : index
    %c0_2 = arith.constant 0 : index
    %2 = vector.load %arg2[%c0_1, %c0_2] : memref<128x128xbf16, #tpu.memory_space<vmem>>, vector<128x128xbf16>
    %cst = arith.constant dense<0.000000e+00> : vector<8x128xf32>
    %3 = tpu.matmul %1, %2, %cst {dimension_numbers = #tpu.dot_dimension_numbers<[1], [0], [0], [1], [0, 0, 1, 1], [], []>} : vector<8x128xbf16>, vector<128x128xbf16>, vector<8x128xf32> -> vector<8x128xf32>
    %c0_3 = arith.constant 0 : index
    %c0_4 = arith.constant 0 : index
    %4 = vector.load %arg3[%c0_3, %c0_4] : memref<1x128xf32, #tpu.memory_space<vmem>>, vector<1x128xf32>
    %5 = vector.broadcast %4 : vector<1x128xf32> to vector<8x128xf32>
    %6 = arith.addf %3, %5 : vector<8x128xf32>
    %c0_5 = arith.constant 0 : index
    %c0_6 = arith.constant 0 : index
    %7 = vector.load %arg4[%c0_5, %c0_6] : memref<1x128xf32, #tpu.memory_space<vmem>>, vector<1x128xf32>
    %c0_7 = arith.constant 0 : index
    %c0_8 = arith.constant 0 : index
    %8 = vector.load %arg5[%c0_7, %c0_8] : memref<1x128xf32, #tpu.memory_space<vmem>>, vector<1x128xf32>
    %c0_9 = arith.constant 0 : index
    %c0_10 = arith.constant 0 : index
    %9 = vector.load %arg6[%c0_9, %c0_10] : memref<8x1xi32, #tpu.memory_space<vmem>>, vector<8x1xi32>
    %cst_11 = arith.constant dense<0.000000e+00> : vector<8xf32>
    %10 = vector.multi_reduction <add>, %6, %cst_11 [1] : vector<8x128xf32> to vector<8xf32>
    %11 = vector.shape_cast %10 : vector<8xf32> to vector<8x1xf32>
    %cst_12 = arith.constant 1.280000e+02 : f32
    %12 = vector.broadcast %cst_12 : f32 to vector<8x1xf32>
    %13 = arith.divf %11, %12 : vector<8x1xf32>
    %14 = vector.broadcast %13 : vector<8x1xf32> to vector<8x128xf32>
    %15 = arith.subf %6, %14 : vector<8x128xf32>
    %16 = arith.mulf %15, %15 : vector<8x128xf32>
    %cst_13 = arith.constant dense<0.000000e+00> : vector<8xf32>
    %17 = vector.multi_reduction <add>, %16, %cst_13 [1] : vector<8x128xf32> to vector<8xf32>
    %18 = vector.shape_cast %17 : vector<8xf32> to vector<8x1xf32>
    %cst_14 = arith.constant 1.280000e+02 : f32
    %19 = vector.broadcast %cst_14 : f32 to vector<8x1xf32>
    %20 = arith.divf %18, %19 : vector<8x1xf32>
    %cst_15 = arith.constant 9.99999974E-6 : f32
    %21 = vector.broadcast %cst_15 : f32 to vector<8x1xf32>
    %22 = arith.addf %20, %21 : vector<8x1xf32>
    %23 = math.rsqrt %22 : vector<8x1xf32>
    %24 = vector.broadcast %23 : vector<8x1xf32> to vector<8x128xf32>
    %25 = arith.mulf %15, %24 : vector<8x128xf32>
    %26 = vector.broadcast %7 : vector<1x128xf32> to vector<8x128xf32>
    %27 = arith.mulf %25, %26 : vector<8x128xf32>
    %28 = vector.broadcast %8 : vector<1x128xf32> to vector<8x128xf32>
    %29 = arith.addf %27, %28 : vector<8x128xf32>
    %cst_16 = arith.constant 0.707106769 : f32
    %30 = vector.broadcast %cst_16 : f32 to vector<8x128xf32>
    %31 = arith.mulf %29, %30 : vector<8x128xf32>
    %32 = math.erf %31 : vector<8x128xf32>
    %cst_17 = arith.constant 1.000000e+00 : f32
    %33 = vector.broadcast %cst_17 : f32 to vector<8x128xf32>
    %34 = arith.addf %33, %32 : vector<8x128xf32>
    %cst_18 = arith.constant 5.000000e-01 : f32
    %35 = vector.broadcast %cst_18 : f32 to vector<8x128xf32>
    %36 = arith.mulf %35, %34 : vector<8x128xf32>
    %37 = arith.mulf %29, %36 : vector<8x128xf32>
    %c0_i32 = arith.constant 0 : i32
    %38 = vector.broadcast %c0_i32 : i32 to vector<8x1xi32>
    %39 = arith.cmpi ne, %9, %38 : vector<8x1xi32>
    %cst_19 = arith.constant 0.000000e+00 : f32
    %40 = vector.shape_cast %39 : vector<8x1xi1> to vector<8x1xi1>
    %41 = vector.broadcast %40 : vector<8x1xi1> to vector<8x128xi1>
    %42 = vector.broadcast %cst_19 : f32 to vector<8x128xf32>
    %43 = arith.select %41, %42, %37 : vector<8x128xi1>, vector<8x128xf32>
    %c0_20 = arith.constant 0 : index
    %c0_21 = arith.constant 0 : index
    %44 = vector.load %arg7[%c0_20, %c0_21] : memref<8x128xf32, #tpu.memory_space<vmem>>, vector<8x128xf32>
    tpu.vector_store %arg7[%c0_20, %c0_21], %43 {strides = array<i32>} : memref<8x128xf32, #tpu.memory_space<vmem>>, vector<8x128xf32>,
    return
  }
  func.func @transform_0(%arg0: i32) -> (i32, i32) {
    %c0_i32 = arith.constant 0 : i32
    %c0_i32_0 = arith.constant 0 : i32
    return %arg0, %c0_i32 : i32, i32
  }
  func.func @transform_1(%arg0: i32) -> (i32, i32) {
    %c0_i32 = arith.constant 0 : i32
    %c0_i32_0 = arith.constant 0 : i32
    %c0_i32_1 = arith.constant 0 : i32
    return %c0_i32, %c0_i32_0 : i32, i32
  }
  func.func @transform_2(%arg0: i32) -> (i32, i32) {
    %c0_i32 = arith.constant 0 : i32
    %c0_i32_0 = arith.constant 0 : i32
    %c0_i32_1 = arith.constant 0 : i32
    return %c0_i32, %c0_i32_0 : i32, i32
  }
  func.func @transform_3(%arg0: i32) -> (i32, i32) {
    %c0_i32 = arith.constant 0 : i32
    %c0_i32_0 = arith.constant 0 : i32
    %c0_i32_1 = arith.constant 0 : i32
    return %c0_i32, %c0_i32_0 : i32, i32
  }
  func.func @transform_4(%arg0: i32) -> (i32, i32) {
    %c0_i32 = arith.constant 0 : i32
    %c0_i32_0 = arith.constant 0 : i32
    %c0_i32_1 = arith.constant 0 : i32
    return %c0_i32, %c0_i32_0 : i32, i32
  }
  func.func @transform_5(%arg0: i32) -> (i32, i32) {
    %c0_i32 = arith.constant 0 : i32
    %c0_i32_0 = arith.constant 0 : i32
    return %arg0, %c0_i32 : i32, i32
  }
  func.func @transform_6(%arg0: i32) -> (i32, i32) {
    %c0_i32 = arith.constant 0 : i32
    %c0_i32_0 = arith.constant 0 : i32
    return %arg0, %c0_i32 : i32, i32
  }
}

</mosaic_0001>

<bundles_post_ra>
// kernel: tpu_custom_call.1
= control target key start
LH: loop header
LB: loop body
LE: loop exit
PB: predicated region body
PF: predicated region fallthrough
CT: control target
= control target key end

     0   :  { %11 = vsyncpa [#allocation3], 0  ;;  %s939_s0 = inlined_call_operand.vmem [shape: f32[16,128], index: 0, kind: input, shape index: {}]   ;;  %s940_s1 = inlined_call_operand.hbm [shape: bf16[128,128], index: 1, kind: input, shape index: {}]   ;;  %s941_s2 = inlined_call_operand.vmem [shape: f32[1,128], index: 2, kind: input, shape index: {}]   ;;  %s942_s3 = inlined_call_operand.vmem [shape: f32[1,128], index: 3, kind: input, shape index: {}]   ;;  %s943_s4 = inlined_call_operand.vmem [shape: f32[1,128], index: 4, kind: input, shape index: {}]   ;;  %s944_s5 = inlined_call_operand.vmem [shape: s32[16,1], index: 5, kind: input, shape index: {}]   ;;  %s945_s6 = inlined_call_operand.hbm [shape: f32[16,128], index: 6, kind: output, shape index: {}]  }
   0x1   :  { %12 = vsyncpa [#allocation4], 0 }
   0x2   :  { %14 = vsyncpa [#allocation4 + $0x1], 0  ;;  %s792_s21 = smov 0   ;;  %s794_s22 = smov 0  }
   0x3   :  { %s796_s23 = smov 0   ;;  %s798_s24 = smov 0  }
   0x4 LB: > { %s813_s25 = sadd.s32 4294967295, %s748_s24   ;;  %s532_s26 = sadd.s32 4294967294, %s748_s24   ;;  %s748_s24 = sphi %s798_s24, %s961_s24   ;;  %s744_s23 = sphi %s796_s23, %s960_s23   ;;  %s740_s22 = sphi %s794_s22, %s959_s22   ;;  %s736_s21 = sphi %s792_s21, %s958_s21  }
   0x5   : > { %s817_s27 = sadd.s32 1, %s748_s24   ;;  %s163_s28 = sadd.s32 1, %s744_s23 }
   0x6   : > { %s160_s29 = ssub.s32 %s748_s24, %s817_s27  ;;  %p173_p0 = scmp.ne.s32.totalorder %s744_s23, %s740_s22 }
   0x7   : > { %p161_p1 = scmp.eq.s32.totalorder %s160_s29, 0  ;;  %p174_p2 = scmp.eq.s32.totalorder %s813_s25, 1 }
   0x8   : > { %p179_p3 = scmp.ne.s32.totalorder %s740_s22, %s736_s21  ;;  %p180_p4 = scmp.eq.s32.totalorder %s532_s26, 1 }
   0x9   : > { %s828_s30 = scalar_select %p161_p1, %s744_s23, %s163_s28  }
   0xa   : > { %p830_p5 = por %p174_p2, %p173_p0  ;;  %p834_p6 = por %p180_p4, %p179_p3 }
   0xb   : > { %p533_p7 = scmp.ge.s32.totalorder %s748_s24, 1  ;;  %p187_p8 = scmp.lt.s32.totalorder %s748_s24, 3 }
   0xc   : > { %s949_s7 = scalar_select %p830_p5, 1, 0 }
   0xd   : > { %s950_s8 = scalar_select %p834_p6, 1, 0 }
   0xe   : > { %p946_p9 = scmp.eq.s32.totalorder %s813_s25, 0  ;;  %p841_p10 = pnand %p533_p7, %p187_p8 }
   0xf   : > { %s750_s10 = smov [#allocation2]   ;;  %s654_s15 = scalar_lea.hbm %s940_s1, 1024 }
  0x10   : > { %s951_s9 = scalar_select %p841_p10, 1, 0 }
  0x11   : > { %s199_s11 = sshll.u32 %s750_s10, 4  ;;  %p591_p11 = pneg %p841_p10  ;;  %s200_s11 = int_to_ptr.vmem [resolvable:$true] %s199_s11 }
  0x12   : > { %p655_p13 = scmp.ne.s32.totalorder %s940_s1, %s654_s15  ;;  %p661_p3 = scmp.lt.u32.totalorder %s654_s15, %s940_s1 }
  0x13   : > { %p849_p12 = pnand %p946_p9, %p591_p11 }
  0x15   : > { %p656_p0 = pneg %p849_p12 }
  0x17   : > { %p657_p1 = pnand %p656_p0, %p655_p13 }
  0x19   : > { %p658_p2 = pneg %p657_p1 }
  0x1b   : > { %p663_p4 = pnand %p661_p3, %p658_p2 }
  0x1d   : > { %666 = shalt.err (!%p663_p4)
}
  0x1e   : > { %s667_s20 = scalar_lea.vmem %s200_s11, 1024  ;;  %p675_p9 = scmp.lt.s32.totalorder %s200_s11, %s200_s11 }
  0x1f   : > { %p668_p7 = scmp.ne.s32.totalorder %s200_s11, %s667_s20  ;;  %p676_p6 = scmp.lt.s32.totalorder %s667_s20, %s667_s20 }
  0x21   : > { %p670_p8 = pnand %p668_p7, %p656_p0  ;;  %p677_p5 = por %p676_p6, %p675_p9 }
  0x23   : > { %p671_p11 = pneg %p670_p8 }
  0x25   : > { %p678_p10 = pnand %p677_p5, %p671_p11 }
  0x27   : > { %681 = shalt.err (!%p678_p10)
}
  0x28   : > { %s751_s26 = smov 64   ;;  %s752_s28 = smov 4  }
  0x29   : > { %594 = dma.hbm_to_vmem [thread:$0]  (!%p849_p12), %s940_s1, 1024, %s200_s11, [#allocation3], %s751_s26, %s751_s26, %s752_s28  }
  0x2a   : > { %p953_p13 = scmp.ne.s32.totalorder %s951_s9, 0 }
  0x2b   : > { %p954_p1 = scmp.eq.s32.totalorder (!%p953_p13), %s813_s25, 0 }
  0x2c   : > { %238 = sbr.rel (%p953_p13) target bundleno = 644 (0x284), region = 44 }
  0x33   : > { %727 = dma.done.wait (%p954_p1), [#allocation3], 1024   ;;  %p955_p0 = pmov %p954_p1 }
  0x34   : > { %v753_v0 = vmov 0.0   ;;  %vm754_vm0 = vmmov 0   ;;  %v642_v1 = vld [vmem:[#allocation2] sm:$0xff]   ;;  %v643_v2 = vld [vmem:[#allocation2 + $0x8] sm:$0xff]   ;;  %v644_v3 = vld [vmem:[#allocation2 + $0x10] sm:$0xff]   ;;  %p271_p5 = scmp.lt.s32.totalorder %s813_s25, 1 }
  0x35   : > { %729 = vsyncadd (%p955_p0), [#allocation3], 4294966272  ;;  %565 = vmatprep.subr.bf16.mxu0 %v753_v0  ;;  %581 = vmatprep.mubr.msk.bf16.mxu0 %vm754_vm0, %v753_v0  ;;  %v645_v4 = vld [vmem:[#allocation2 + $0x18] sm:$0xff]   ;;  %v646_v5 = vld [vmem:[#allocation2 + $0x20] sm:$0xff]   ;;  %v755_v17 = vmov 0   ;;  %s268_s10 = sand.u32 1, %s740_s22  }
  0x36   : > { %566 = vmatpush3.bf16.msra.mxu0 %v642_v1  ;;  %s272_s9 = scalar_select %p271_p5, %s813_s25, 1  ;;  %v647_v6 = vld [vmem:[#allocation2 + $0x28] sm:$0xff]   ;;  %v648_v7 = vld [vmem:[#allocation2 + $0x30] sm:$0xff]   ;;  %v649_v8 = vld [vmem:[#allocation2 + $0x38] sm:$0xff]   ;;  %640 = vset.pattern.permute.xlu1 %v755_v17 }
  0x37   : > { %567 = vmatprep.subr.bf16.mxu0 %v753_v0  ;;  %v541_v11 = vld [vmem:[%s941_s2] ss:$0 sm:$0xff]  ;;  %641 = vset.pattern.permute.xlu0 %v755_v17  ;;  %s436_s17 = scalar_lea.sflag [#allocation4], %s268_s10  ;;  %p956_p9 = scmp.ne.s32.totalorder %s949_s7, 0 }
  0x38   : > { %s539_s11 = sshll.u32 %s272_s9, 3  ;;  %v550_v28 = vld [vmem:[%s942_s3] ss:$0 sm:$0xff]  ;;  %s538_s9 = sshll.u32 %s268_s10, 3 }
  0x39   : > { %s274_s14 = scalar_lea.vmem %s939_s0, %s539_s11  ;;  %s278_s19 = scalar_lea.vmem %s944_s5, %s539_s11  ;;  %v551_v30 = vld [vmem:[%s943_s4] ss:$0 sm:$0xff] }
  0x3a   : > { %568 = vmatpush3.bf16.msra.mxu0 %v643_v2  ;;  %v280_v9 = vld [vmem:[%s274_s14] sm:$0xff]  ;;  %s553_s11 = sshll.u32 %s813_s25, 7  ;;  %s270_s12 = scalar_lea.vmem [#allocation5], %s538_s9 }
  0x3b   : > { %569 = vmatprep.subr.bf16.mxu0 %v753_v0  ;;  %v281_v10 = vpack.c.bf16 %v280_v9, %v280_v9  ;;  %v395_v18 = vld [vmem:[%s278_s19] sm:$0xff]  ;;  %s449_s13 = sshll.u32 %s270_s12, 4  ;;  %s897_s16 = scalar_lea.hbm %s945_s6, %s553_s11  ;;  %s899_s13 = int_to_ptr.vmem [resolvable:$true] %s449_s13 }
  0x3c   : > { %vm427_vm1 = vcmp.ne.s32.totalorder %v395_v18, 0  ;;  %s682_s18 = scalar_lea.vmem %s899_s13, 128  ;;  %s756_s25 = smov [#allocation5]  }
  0x3d   : > { %v428_v19 = vsel %vm427_vm1, 1, %v755_v17  ;;  %p683_p6 = scmp.ne.s32.totalorder %s899_s13, %s682_s18  ;;  %s686_s19 = sshll.u32 %s756_s25, 4  ;;  %s687_s19 = int_to_ptr.vmem [resolvable:$false] %s686_s19 }
  0x3e   : > { %570 = vmatpush3.bf16.msra.mxu0 %v644_v3  ;;  %430 = vperm.xlu1 %640, %v428_v19   ;;  %s688_s20 = scalar_lea.vmem %s687_s19, 256  ;;  %p689_p2 = scmp.lt.s32.totalorder %s899_s13, %s687_s19 }
  0x3f   : > { %571 = vmatprep.subr.bf16.mxu0 %v753_v0  ;;  %p684_p10 = pnand %p683_p6, %p956_p9  ;;  %p690_p3 = scmp.lt.s32.totalorder %s688_s20, %s682_s18 }
  0x41   : > { %p685_p12 = pneg %p684_p10  ;;  %p691_p4 = por %p690_p3, %p689_p2 }
  0x42   : > { %572 = vmatpush3.bf16.msra.mxu0 %v645_v4 }
  0x43   : > { %573 = vmatprep.subr.bf16.mxu0 %v753_v0  ;;  %p692_p7 = pnand %p691_p4, %p685_p12 }
  0x46   : > { %574 = vmatpush3.bf16.msra.mxu0 %v646_v5 }
  0x47   : > { %575 = vmatprep.subr.bf16.mxu0 %v753_v0 }
  0x4a   : > { %576 = vmatpush3.bf16.msra.mxu0 %v647_v6 }
  0x4b   : > { %577 = vmatprep.subr.bf16.mxu0 %v753_v0 }
  0x4e   : > { %578 = vmatpush3.bf16.msra.mxu0 %v648_v7 }
  0x4f   : > { %579 = vmatprep.subr.bf16.mxu0 %v753_v0 }
  0x52   : > { %580 = vmatpush3.bf16.msra.mxu0 %v649_v8 }
  0x55   : > { %582 = vmatmul.mubr.bf16.vlgmr.msra.gmra.mrb[0].mxu0 %v281_v10 }
  0xbd   : > { %v431_v35 = vpop.permute.xlu1 %430 }
  0xbe   : > { %vm432_vm2 = vcmp.eq.s32.totalorder %v431_v35, 1 }
 0x128   : > { %v387_v12 = vpop.f32.mrb[0].mxu0 }
 0x129   : > { %v388_v13 = vadd.f32 %v541_v11, %v387_v12  ;;  %v583_v14 = vpop.f32.mrb[1].mxu0 }
 0x12a   : > { %v390_v15 = vpop.f32.mrb[2].mxu0 }
 0x12b   : > { %396 = vadd.xlane.f32.xlu0 %v388_v13  ;;  %v584_v16 = vpop.f32.mrb[3].mxu0 }
 0x1b8   : > { %v397_v20 = vpop.xlane.xlu0 %396 }
 0x1b9   : > { %v399_v21 = vmul.f32 0.0078125, %v397_v20 }
 0x1bb   : > { %v400_v22 = vsub.f32 %v388_v13, %v399_v21 }
 0x1bd   : > { %v401_v23 = vmul.f32 %v400_v22, %v400_v22 }
 0x1bf   : > { %402 = vadd.xlane.f32.xlu0 %v401_v23 }
 0x24c   : > { %v403_v24 = vpop.xlane.xlu0 %402 }
 0x24d   : > { %v404_v25 = vmul.f32 0.0078125, %v403_v24 }
 0x24f   : > { %v405_v26 = vadd.f32 1e-05, %v404_v25 }
 0x251   : > { %650 = vrsqrt.f32 %v405_v26 }
 0x25b   : > { %v651_v27 = vpop.eup %650 }
 0x25c   : > { %v407_v29 = vmul.f32 %v651_v27, %v400_v22 }
 0x25e   : > { %v414_v31 = vmul.f32 %v550_v28, %v407_v29 }
 0x260   : > { %v421_v32 = vadd.f32 %v551_v30, %v414_v31 }
 0x262   : > { %v422_v33 = vmul.f32 0.70710677, %v421_v32 }
 0x264   : > { %652 = verf.f32 %v422_v33 }
 0x26e   : > { %v653_v34 = vpop.eup %652 }
 0x26f   : > { %v424_v36 = vadd.f32 1.0, %v653_v34 }
 0x271   : > { %v425_v37 = vmul.f32 0.5, %v424_v36 }
 0x273   : > { %v426_v38 = vmul.f32 %v425_v37, %v421_v32 }
 0x275   : > { %v433_v39 = vsel %vm432_vm2, 0.0, %v426_v38 }
 0x276   : > { %434 = vst [vmem:[%s270_s12] sm:$0xff] %v433_v39 }
 0x277   : > { %695 = shalt.err (!%p692_p7)
}
 0x278   : > { %s696_s26 = scalar_lea.hbm %s897_s16, 128  ;;  %s700_s10 = scalar_lea.hbm %s945_s6, 256 }
 0x279   : > { %p697_p8 = scmp.ne.s32.totalorder %s897_s16, %s696_s26  ;;  %p701_p1 = scmp.lt.u32.totalorder %s897_s16, %s945_s6 }
 0x27a   : > { %p702_p0 = scmp.lt.u32.totalorder %s700_s10, %s696_s26  ;;  %p704_p6 = scmp.lt.u32.totalorder %s696_s26, %s897_s16 }
 0x27b   : > { %p698_p11 = pnand %p697_p8, %p956_p9 }
 0x27c   : > { %p703_p5 = por %p702_p0, %p701_p1 }
 0x27d   : > { %p699_p13 = pneg %p698_p11 }
 0x27e   : > { %p705_p10 = por %p704_p6, %p703_p5 }
 0x280   : > { %p706_p12 = pnand %p705_p10, %p699_p13 }
 0x282   : > { %709 = shalt.err (!%p706_p12)
}
 0x283   : > { %589 = dma.vmem_to_hbm [thread:$0]  (%p956_p9), %s899_s13, 128, %s897_s16, %s436_s17  }
 0x284 PF: > { %p601_p2 = scmp.ge.s32.totalorder %s748_s24, 2  ;;  %s461_s12 = sand.u32 1, %s736_s21  }
 0x285   : > { %p957_p3 = scmp.ne.s32.totalorder %s950_s8, 0  ;;  %s462_s14 = scalar_lea.sflag [#allocation4], %s461_s12 }
 0x287   : > { %p596_p4 = pnand %p601_p2, %p957_p3 }
 0x289   : > { %731 = dma.done.wait (!%p596_p4), %s462_s14, 128  }
 0x28a   : > { %733 = vsyncadd (!%p596_p4), %s462_s14, 4294967168  ;;  %p17_p7 = scmp.ge.s32.totalorder %s817_s27, 4   ;;  %s958_s21 = smov %s740_s22 }
 0x28b   : > { %s959_s22 = smov %s744_s23  ;;  %s960_s23 = smov %s828_s30 }
 0x28c   : > { %s961_s24 = smov %s817_s27  ;;  %19 = sbr.rel (!%p17_p7) target bundleno = 4 (0x4), region = 87 }
 0x293   :  { %467 = vsyncpa [#allocation3], 1 }
 0x294   :  { %469 = vsyncpa [#allocation3 + $0x1], 1 }
 0x295   :  { %470 = vsyncpa [#allocation4], 1 }
 0x296   :  { %472 = vsyncpa [#allocation4 + $0x1], 1 }

</bundles_post_ra>
